<compile_context>
chip_gen: v5e
topology: v5e:2x2
jax: 0.10.0
libtpu: 0.0.40
codegen_flags: <defaults>
</compile_context>

<pallas_src>
import jax
import jax.numpy as jnp
from jax.experimental import pallas as pl
from jax.experimental.pallas import tpu as pltpu

input_size = 4
hidden_size = 4
num_classes = 4

_LANE = 128


def _round_up(a, b):
    return ((a + b - 1) // b) * b


def mlp_logsoftmax_kernel(x_ref, w1_ref, b1_ref, w2_ref, b2_ref, o_ref):
    # x_ref:  (input_size,  T)        batch on the lane axis (lane-dense)
    # w1_ref: (hidden_size, input_size)   = W1^T   (resident across grid steps)
    # b1_ref: (hidden_size, 1)
    # w2_ref: (num_classes, hidden_size)  = W2^T
    # b2_ref: (num_classes, 1)
    # o_ref:  (num_classes, T)
    x = x_ref[...]
    w1t = w1_ref[...]
    w2t = w2_ref[...]
    t = x.shape[-1]

    # Linear 1 + tanh: unrolled broadcast-FMAs on the VPU; bias folded into acc init.
    acc1 = jnp.broadcast_to(b1_ref[...], (hidden_size, t)).astype(jnp.float32)
    for i in range(input_size):
        acc1 = acc1 + w1t[:, i:i + 1] * x[i:i + 1, :]
    h = jnp.tanh(acc1)

    # Linear 2: same unrolled VPU FMA pattern.
    acc2 = jnp.broadcast_to(b2_ref[...], (num_classes, t)).astype(jnp.float32)
    for j in range(hidden_size):
        acc2 = acc2 + w2t[:, j:j + 1] * h[j:j + 1, :]

    # log_softmax over the class (sublane) axis — numerically stable form.
    m = jnp.max(acc2, axis=0, keepdims=True)
    s = acc2 - m
    lse = jnp.log(jnp.sum(jnp.exp(s), axis=0, keepdims=True))
    o_ref[...] = (s - lse).astype(o_ref.dtype)


def model_forward(x, w1, b1, w2, b2, *, tile_b=2048):
    """x: (B, input_size); w1: (in, hidden); b1: (hidden,); w2: (hidden, classes); b2: (classes,)."""
    B = x.shape[0]
    dtype = x.dtype

    # Transposed, lane-dense layout.
    xt = x.T                                   # (input_size, B)
    w1t = w1.T                                 # (hidden_size, input_size)
    w2t = w2.T                                 # (num_classes, hidden_size)
    b1c = b1.reshape(hidden_size, 1)
    b2c = b2.reshape(num_classes, 1)

    # Pad batch so the lane (last) dim of every block is a multiple of 128.
    if B <= tile_b:
        tile = _round_up(max(B, _LANE), _LANE)
        b_pad = tile
    else:
        tile = tile_b
        b_pad = _round_up(B, tile)
    if b_pad != B:
        xt = jnp.pad(xt, ((0, 0), (0, b_pad - B)))

    grid = (b_pad // tile,)

    flops_per_col = 2 * input_size * hidden_size + 2 * hidden_size * num_classes + 4 * num_classes
    cost = pl.CostEstimate(
        flops=b_pad * flops_per_col,
        transcendentals=b_pad * (hidden_size + num_classes + 1),
        bytes_accessed=4 * (input_size * b_pad + num_classes * b_pad
                            + input_size * hidden_size + hidden_size
                            + hidden_size * num_classes + num_classes),
    )

    out_t = pl.pallas_call(
        mlp_logsoftmax_kernel,
        out_shape=jax.ShapeDtypeStruct((num_classes, b_pad), dtype),
        grid=grid,
        in_specs=[
            pl.BlockSpec((input_size, tile), lambda i: (0, i)),          # x^T tile
            pl.BlockSpec((hidden_size, input_size), lambda i: (0, 0)),   # W1^T resident
            pl.BlockSpec((hidden_size, 1), lambda i: (0, 0)),            # b1 resident
            pl.BlockSpec((num_classes, hidden_size), lambda i: (0, 0)),  # W2^T resident
            pl.BlockSpec((num_classes, 1), lambda i: (0, 0)),            # b2 resident
        ],
        out_specs=pl.BlockSpec((num_classes, tile), lambda i: (0, i)),
        compiler_params=pltpu.CompilerParams(
            dimension_semantics=("parallel",),
        ),
        cost_estimate=cost,
    )(xt, w1t, b1c, w2t, b2c)

    # Back to PyTorch layout (B, num_classes), dropping batch padding.
    return out_t[:, :B].T


def init_params(key):
    # Deterministic init mimicking PyTorch nn.Linear (uniform +/- 1/sqrt(fan_in)).
    k1, k2, k3, k4 = jax.random.split(key, 4)
    bound1 = 1.0 / jnp.sqrt(jnp.float32(input_size))
    bound2 = 1.0 / jnp.sqrt(jnp.float32(hidden_size))
    w1 = jax.random.uniform(k1, (input_size, hidden_size), jnp.float32, -bound1, bound1)
    b1 = jax.random.uniform(k2, (hidden_size,), jnp.float32, -bound1, bound1)
    w2 = jax.random.uniform(k3, (hidden_size, num_classes), jnp.float32, -bound2, bound2)
    b2 = jax.random.uniform(k4, (num_classes,), jnp.float32, -bound2, bound2)
    return w1, b1, w2, b2


if __name__ == "__main__":
    key = jax.random.PRNGKey(0)
    kx, kp = jax.random.split(key)
    batch = 8
    x = jax.random.normal(kx, (batch, input_size), jnp.float32)
    w1, b1, w2, b2 = init_params(kp)

    out = model_forward(x, w1, b1, w2, b2)
    jax.block_until_ready(out)

    # Cross-check against a pure-JAX reference (PyTorch forward semantics).
    h = jnp.tanh(x @ w1 + b1)
    z = h @ w2 + b2
    ref = jax.nn.log_softmax(z, axis=-1)
    assert out.shape == (batch, num_classes)
    assert jnp.allclose(out, ref, atol=1e-5, rtol=1e-5), "mismatch vs reference"

    print("KERNEL_OK")
</pallas_src>

<mosaic_0001>
module attributes {stable_mosaic.version = 11 : i64} {
  func.func @mlp_logsoftmax_kernel(%arg0: i32, %arg1: memref<4x128xf32, #tpu.memory_space<vmem>>, %arg2: memref<4x4xf32, #tpu.memory_space<vmem>>, %arg3: memref<4x1xf32, #tpu.memory_space<vmem>>, %arg4: memref<4x4xf32, #tpu.memory_space<vmem>>, %arg5: memref<4x1xf32, #tpu.memory_space<vmem>>, %arg6: memref<4x128xf32, #tpu.memory_space<vmem>>) attributes {dimension_semantics = [#tpu.dimension_semantics<parallel>], iteration_bounds = array<i64: 1>, scalar_prefetch = 0 : i64, scratch_operands = 0 : i64, tpu.core_type = #tpu.core_type<tc>, window_params = [{transform_indices = @transform_0, window_bounds = array<i64: 4, 128>}, {pipeline_mode = #tpu.pipeline_mode<synchronous>, transform_indices = @transform_1, window_bounds = array<i64: 4, 4>}, {pipeline_mode = #tpu.pipeline_mode<synchronous>, transform_indices = @transform_2, window_bounds = array<i64: 4, 1>}, {pipeline_mode = #tpu.pipeline_mode<synchronous>, transform_indices = @transform_3, window_bounds = array<i64: 4, 4>}, {pipeline_mode = #tpu.pipeline_mode<synchronous>, transform_indices = @transform_4, window_bounds = array<i64: 4, 1>}, {transform_indices = @transform_5, window_bounds = array<i64: 4, 128>}]} {
    %c0 = arith.constant 0 : index
    %c0_0 = arith.constant 0 : index
    %0 = vector.load %arg1[%c0, %c0_0] : memref<4x128xf32, #tpu.memory_space<vmem>>, vector<4x128xf32>
    %c0_1 = arith.constant 0 : index
    %c0_2 = arith.constant 0 : index
    %1 = vector.load %arg2[%c0_1, %c0_2] : memref<4x4xf32, #tpu.memory_space<vmem>>, vector<4x4xf32>
    %c0_3 = arith.constant 0 : index
    %c0_4 = arith.constant 0 : index
    %2 = vector.load %arg4[%c0_3, %c0_4] : memref<4x4xf32, #tpu.memory_space<vmem>>, vector<4x4xf32>
    %c0_5 = arith.constant 0 : index
    %c0_6 = arith.constant 0 : index
    %3 = vector.load %arg3[%c0_5, %c0_6] : memref<4x1xf32, #tpu.memory_space<vmem>>, vector<4x1xf32>
    %4 = vector.shape_cast %3 : vector<4x1xf32> to vector<4x1xf32>
    %5 = vector.broadcast %4 : vector<4x1xf32> to vector<4x128xf32>
    %6 = vector.extract_strided_slice %1 {offsets = [0, 0], sizes = [4, 1], strides = [1, 1]} : vector<4x4xf32> to vector<4x1xf32>
    %7 = vector.extract_strided_slice %0 {offsets = [0, 0], sizes = [1, 128], strides = [1, 1]} : vector<4x128xf32> to vector<1x128xf32>
    %8 = vector.broadcast %6 : vector<4x1xf32> to vector<4x128xf32>
    %9 = vector.broadcast %7 : vector<1x128xf32> to vector<4x128xf32>
    %10 = arith.mulf %8, %9 : vector<4x128xf32>
    %11 = arith.addf %5, %10 : vector<4x128xf32>
    %12 = vector.extract_strided_slice %1 {offsets = [0, 1], sizes = [4, 1], strides = [1, 1]} : vector<4x4xf32> to vector<4x1xf32>
    %13 = vector.extract_strided_slice %0 {offsets = [1, 0], sizes = [1, 128], strides = [1, 1]} : vector<4x128xf32> to vector<1x128xf32>
    %14 = vector.broadcast %12 : vector<4x1xf32> to vector<4x128xf32>
    %15 = vector.broadcast %13 : vector<1x128xf32> to vector<4x128xf32>
    %16 = arith.mulf %14, %15 : vector<4x128xf32>
    %17 = arith.addf %11, %16 : vector<4x128xf32>
    %18 = vector.extract_strided_slice %1 {offsets = [0, 2], sizes = [4, 1], strides = [1, 1]} : vector<4x4xf32> to vector<4x1xf32>
    %19 = vector.extract_strided_slice %0 {offsets = [2, 0], sizes = [1, 128], strides = [1, 1]} : vector<4x128xf32> to vector<1x128xf32>
    %20 = vector.broadcast %18 : vector<4x1xf32> to vector<4x128xf32>
    %21 = vector.broadcast %19 : vector<1x128xf32> to vector<4x128xf32>
    %22 = arith.mulf %20, %21 : vector<4x128xf32>
    %23 = arith.addf %17, %22 : vector<4x128xf32>
    %24 = vector.extract_strided_slice %1 {offsets = [0, 3], sizes = [4, 1], strides = [1, 1]} : vector<4x4xf32> to vector<4x1xf32>
    %25 = vector.extract_strided_slice %0 {offsets = [3, 0], sizes = [1, 128], strides = [1, 1]} : vector<4x128xf32> to vector<1x128xf32>
    %26 = vector.broadcast %24 : vector<4x1xf32> to vector<4x128xf32>
    %27 = vector.broadcast %25 : vector<1x128xf32> to vector<4x128xf32>
    %28 = arith.mulf %26, %27 : vector<4x128xf32>
    %29 = arith.addf %23, %28 : vector<4x128xf32>
    %30 = math.tanh %29 : vector<4x128xf32>
    %c0_7 = arith.constant 0 : index
    %c0_8 = arith.constant 0 : index
    %31 = vector.load %arg5[%c0_7, %c0_8] : memref<4x1xf32, #tpu.memory_space<vmem>>, vector<4x1xf32>
    %32 = vector.shape_cast %31 : vector<4x1xf32> to vector<4x1xf32>
    %33 = vector.broadcast %32 : vector<4x1xf32> to vector<4x128xf32>
    %34 = vector.extract_strided_slice %2 {offsets = [0, 0], sizes = [4, 1], strides = [1, 1]} : vector<4x4xf32> to vector<4x1xf32>
    %35 = vector.extract_strided_slice %30 {offsets = [0, 0], sizes = [1, 128], strides = [1, 1]} : vector<4x128xf32> to vector<1x128xf32>
    %36 = vector.broadcast %34 : vector<4x1xf32> to vector<4x128xf32>
    %37 = vector.broadcast %35 : vector<1x128xf32> to vector<4x128xf32>
    %38 = arith.mulf %36, %37 : vector<4x128xf32>
    %39 = arith.addf %33, %38 : vector<4x128xf32>
    %40 = vector.extract_strided_slice %2 {offsets = [0, 1], sizes = [4, 1], strides = [1, 1]} : vector<4x4xf32> to vector<4x1xf32>
    %41 = vector.extract_strided_slice %30 {offsets = [1, 0], sizes = [1, 128], strides = [1, 1]} : vector<4x128xf32> to vector<1x128xf32>
    %42 = vector.broadcast %40 : vector<4x1xf32> to vector<4x128xf32>
    %43 = vector.broadcast %41 : vector<1x128xf32> to vector<4x128xf32>
    %44 = arith.mulf %42, %43 : vector<4x128xf32>
    %45 = arith.addf %39, %44 : vector<4x128xf32>
    %46 = vector.extract_strided_slice %2 {offsets = [0, 2], sizes = [4, 1], strides = [1, 1]} : vector<4x4xf32> to vector<4x1xf32>
    %47 = vector.extract_strided_slice %30 {offsets = [2, 0], sizes = [1, 128], strides = [1, 1]} : vector<4x128xf32> to vector<1x128xf32>
    %48 = vector.broadcast %46 : vector<4x1xf32> to vector<4x128xf32>
    %49 = vector.broadcast %47 : vector<1x128xf32> to vector<4x128xf32>
    %50 = arith.mulf %48, %49 : vector<4x128xf32>
    %51 = arith.addf %45, %50 : vector<4x128xf32>
    %52 = vector.extract_strided_slice %2 {offsets = [0, 3], sizes = [4, 1], strides = [1, 1]} : vector<4x4xf32> to vector<4x1xf32>
    %53 = vector.extract_strided_slice %30 {offsets = [3, 0], sizes = [1, 128], strides = [1, 1]} : vector<4x128xf32> to vector<1x128xf32>
    %54 = vector.broadcast %52 : vector<4x1xf32> to vector<4x128xf32>
    %55 = vector.broadcast %53 : vector<1x128xf32> to vector<4x128xf32>
    %56 = arith.mulf %54, %55 : vector<4x128xf32>
    %57 = arith.addf %51, %56 : vector<4x128xf32>
    %cst = arith.constant dense<0xFF800000> : vector<128xf32>
    %58 = vector.multi_reduction <maximumf>, %57, %cst [0] : vector<4x128xf32> to vector<128xf32>
    %59 = vector.shape_cast %58 : vector<128xf32> to vector<1x128xf32>
    %60 = vector.broadcast %59 : vector<1x128xf32> to vector<4x128xf32>
    %61 = arith.subf %57, %60 : vector<4x128xf32>
    %62 = math.exp %61 : vector<4x128xf32>
    %cst_9 = arith.constant dense<0.000000e+00> : vector<128xf32>
    %63 = vector.multi_reduction <add>, %62, %cst_9 [0] : vector<4x128xf32> to vector<128xf32>
    %64 = vector.shape_cast %63 : vector<128xf32> to vector<1x128xf32>
    %65 = math.log %64 : vector<1x128xf32>
    %66 = vector.broadcast %65 : vector<1x128xf32> to vector<4x128xf32>
    %67 = arith.subf %61, %66 : vector<4x128xf32>
    %c0_10 = arith.constant 0 : index
    %c0_11 = arith.constant 0 : index
    %68 = vector.load %arg6[%c0_10, %c0_11] : memref<4x128xf32, #tpu.memory_space<vmem>>, vector<4x128xf32>
    tpu.vector_store %arg6[%c0_10, %c0_11], %67 {strides = array<i32>} : memref<4x128xf32, #tpu.memory_space<vmem>>, vector<4x128xf32>,
    return
  }
  func.func @transform_0(%arg0: i32) -> (i32, i32) {
    %c0_i32 = arith.constant 0 : i32
    %c0_i32_0 = arith.constant 0 : i32
    return %c0_i32, %arg0 : i32, i32
  }
  func.func @transform_1(%arg0: i32) -> (i32, i32) {
    %c0_i32 = arith.constant 0 : i32
    %c0_i32_0 = arith.constant 0 : i32
    %c0_i32_1 = arith.constant 0 : i32
    return %c0_i32, %c0_i32_0 : i32, i32
  }
  func.func @transform_2(%arg0: i32) -> (i32, i32) {
    %c0_i32 = arith.constant 0 : i32
    %c0_i32_0 = arith.constant 0 : i32
    %c0_i32_1 = arith.constant 0 : i32
    return %c0_i32, %c0_i32_0 : i32, i32
  }
  func.func @transform_3(%arg0: i32) -> (i32, i32) {
    %c0_i32 = arith.constant 0 : i32
    %c0_i32_0 = arith.constant 0 : i32
    %c0_i32_1 = arith.constant 0 : i32
    return %c0_i32, %c0_i32_0 : i32, i32
  }
  func.func @transform_4(%arg0: i32) -> (i32, i32) {
    %c0_i32 = arith.constant 0 : i32
    %c0_i32_0 = arith.constant 0 : i32
    %c0_i32_1 = arith.constant 0 : i32
    return %c0_i32, %c0_i32_0 : i32, i32
  }
  func.func @transform_5(%arg0: i32) -> (i32, i32) {
    %c0_i32 = arith.constant 0 : i32
    %c0_i32_0 = arith.constant 0 : i32
    return %c0_i32, %arg0 : i32, i32
  }
}

</mosaic_0001>

<bundles_post_ra>
// kernel: tpu_custom_call.1
= control target key start
LH: loop header
LB: loop body
LE: loop exit
PB: predicated region body
PF: predicated region fallthrough
CT: control target
= control target key end

     0   :  { %v178_v1 = vmov 0   ;;  %v179_v2 = vmov 1   ;;  %s231_s0 = inlined_call_operand.vmem [shape: f32[4,128], index: 0, kind: input, shape index: {}]   ;;  %s232_s1 = inlined_call_operand.vmem [shape: f32[4,4], index: 1, kind: input, shape index: {}]   ;;  %s233_s2 = inlined_call_operand.vmem [shape: f32[4,1], index: 2, kind: input, shape index: {}]   ;;  %s234_s3 = inlined_call_operand.vmem [shape: f32[4,4], index: 3, kind: input, shape index: {}]   ;;  %s235_s4 = inlined_call_operand.vmem [shape: f32[4,1], index: 4, kind: input, shape index: {}]   ;;  %s236_s5 = inlined_call_operand.hbm [shape: f32[4,128], index: 5, kind: output, shape index: {}]  }
   0x1   :  { %v22_v0 = vld [vmem:[%s232_s1] sm:$0xf]  ;;  %138 = vset.pattern.permute.xlu0 %v178_v1  ;;  %139 = vset.pattern.permute.xlu1 %v179_v2 }
   0x2   :  { %32 = vperm.xlu0 %138, %v22_v0   ;;  %39 = vperm.xlu1 %139, %v22_v0  }
   0x3   :  { %10 = vsyncpa [#allocation3], 0  ;;  %v180_v3 = vmov 3   ;;  %v24_v4 = vld [vmem:[%s233_s2] sm:$0xf]  ;;  %v181_v5 = vmov 2  }
   0x4   :  { %141 = vset.pattern.permute.xlu2 %v180_v3  ;;  %v23_v6 = vld [vmem:[%s234_s3] sm:$0xf]  ;;  %vm95_vm0 = vcmask 1043456   ;;  %s124_s27 = sshll.u32 %s236_s5, 4  ;;  %s125_s27 = int_to_ptr.hbm [resolvable:$true] %s124_s27 }
   0x5   :  { %53 = vperm.xlu2 %141, %v22_v0   ;;  %v60_v7 = vld [vmem:[%s235_s4] sm:$0xf] }
   0x6   :  { %v21_v9 = vld [vmem:[%s231_s0] sm:$0xf]  ;;  %s182_s0 = smov [#allocation2]  }
   0x7   :  { %v35_v11 = vperm.slane %v21_v9, 0  ;;  %v42_v12 = vperm.slane %v21_v9, 1  ;;  %v49_v13 = vperm.slane %v21_v9, 2  ;;  %v56_v16 = vperm.slane %v21_v9, 3  ;;  %s122_s3 = sshll.u32 %s182_s0, 4  ;;  %s123_s3 = int_to_ptr.vmem [resolvable:$true] %s122_s3 }
   0xa   :  { %27 = vperm.xlu0 %138, %v24_v4   ;;  %140 = vset.pattern.permute.xlu1 %v181_v5 }
   0xb   :  { %46 = vperm.xlu1 %140, %v22_v0  }
   0xd   :  { %142 = vset.pattern.permute.xlu2 %v178_v1 }
   0xe   :  { %68 = vperm.xlu2 %142, %v23_v6  }
  0x12   :  { %63 = vperm.xlu0 %138, %v60_v7  }
  0x13   :  { %143 = vset.pattern.permute.xlu1 %v179_v2 }
  0x14   :  { %75 = vperm.xlu1 %143, %v23_v6  }
  0x16   :  { %144 = vset.pattern.permute.xlu2 %v181_v5 }
  0x17   :  { %82 = vperm.xlu2 %144, %v23_v6  }
  0x1a   :  { %145 = vset.pattern.permute.xlu0 %v180_v3 }
  0x1b   :  { %89 = vperm.xlu0 %145, %v23_v6  }
  0x5f   :  { %v54_v15 = vpop.permute.xlu2 %53 }
  0x60   :  { %v57_v23 = vmul.f32 %v56_v16, %v54_v15 }
  0x68   :  { %v69_v26 = vpop.permute.xlu2 %68 }
  0x71   :  { %v83_v34 = vpop.permute.xlu2 %82 }
  0x74   :  { %v33_v8 = vpop.permute.xlu0 %32  ;;  %v40_v10 = vpop.permute.xlu1 %39 }
  0x75   :  { %v36_v14 = vmul.f32 %v35_v11, %v33_v8  ;;  %v43_v18 = vmul.f32 %v42_v12, %v40_v10 }
  0x7c   :  { %v28_v17 = vpop.permute.xlu0 %27 }
  0x7d   :  { %v37_v19 = vadd.f32 %v36_v14, %v28_v17  ;;  %v47_v20 = vpop.permute.xlu1 %46 }
  0x7e   :  { %v50_v21 = vmul.f32 %v49_v13, %v47_v20 }
  0x7f   :  { %v44_v22 = vadd.f32 %v43_v18, %v37_v19 }
  0x81   :  { %v51_v24 = vadd.f32 %v50_v21, %v44_v22 }
  0x83   :  { %v58_v25 = vadd.f32 %v57_v23, %v51_v24 }
  0x84   :  { %v64_v27 = vpop.permute.xlu0 %63 }
  0x85   :  { %146 = vtanh.f32 %v58_v25 }
  0x86   :  { %v76_v31 = vpop.permute.xlu1 %75 }
  0x8b   :  { %v147_v28 = vpop.eup %146 }
  0x8c   :  { %v71_v29 = vperm.slane %v147_v28, 0  ;;  %v78_v30 = vperm.slane %v147_v28, 1  ;;  %v85_v33 = vperm.slane %v147_v28, 2  ;;  %v92_v37 = vperm.slane %v147_v28, 3 }
  0x8d   :  { %v90_v38 = vpop.permute.xlu0 %89 }
  0x8e   :  { %v72_v32 = vmul.f32 %v71_v29, %v69_v26  ;;  %v79_v36 = vmul.f32 %v78_v30, %v76_v31  ;;  %v86_v39 = vmul.f32 %v85_v33, %v83_v34  ;;  %v93_v42 = vmul.f32 %v92_v37, %v90_v38 }
  0x90   :  { %v73_v35 = vadd.f32 %v72_v32, %v64_v27 }
  0x92   :  { %v80_v40 = vadd.f32 %v79_v36, %v73_v35 }
  0x94   :  { %v87_v41 = vadd.f32 %v86_v39, %v80_v40 }
  0x96   :  { %v94_v43 = vadd.f32 %v93_v42, %v87_v41 }
  0x98   :  { %v96_v44 = vsel %vm95_vm0, %v94_v43, -inf }
  0x99   :  { %v97_v45 = vrot.slane %v96_v44, 4 }
  0x9b   :  { %v98_v46 = vmax.f32 %v96_v44, %v97_v45 }
  0x9d   :  { %v99_v47 = vrot.slane %v98_v46, 2 }
  0x9f   :  { %v100_v48 = vmax.f32 %v98_v46, %v99_v47 }
  0xa1   :  { %v101_v49 = vrot.slane %v100_v48, 1 }
  0xa3   :  { %v102_v50 = vmax.f32 %v100_v48, %v101_v49 }
  0xa5   :  { %v103_v51 = vsub.f32 %v94_v43, %v102_v50 }
  0xa7   :  { %v104_v52 = vmul.f32 1.442695, %v103_v51 }
  0xa9   :  { %148 = vpow2.f32 %v104_v52 }
  0xaf   :  { %v149_v53 = vpop.eup %148 }
  0xb0   :  { %v106_v54 = vsel %vm95_vm0, %v149_v53, 0.0 }
  0xb1   :  { %v107_v55 = vrot.slane %v106_v54, 4 }
  0xb3   :  { %v108_v56 = vadd.f32 %v107_v55, %v106_v54 }
  0xb5   :  { %v109_v57 = vrot.slane %v108_v56, 2 }
  0xb7   :  { %v110_v58 = vadd.f32 %v109_v57, %v108_v56 }
  0xb9   :  { %v111_v59 = vrot.slane %v110_v58, 1 }
  0xbb   :  { %v112_v60 = vadd.f32 %v111_v59, %v110_v58 }
  0xbd   :  { %150 = vlog2.f32 %v112_v60 }
  0xc3   :  { %v151_v61 = vpop.eup %150 }
  0xc4   :  { %v114_v62 = vmul.f32 0.6931472, %v151_v61 }
  0xc6   :  { %v115_v63 = vsub.f32 %v103_v51, %v114_v62 }
  0xc8   :  { %116 = vst [vmem:[#allocation2] sm:$0xf] %v115_v63 }
  0xc9   :  { %127 = dma.vmem_to_hbm [thread:$0]  %s123_s3, 64, %s125_s27, [#allocation3]  }
  0xca   :  { %176 = dma.done.wait [#allocation3], 64  }
  0xcb   :  { %177 = vsyncadd [#allocation3], 4294967232 }
  0xcc   :  { %132 = vsyncpa [#allocation3], 1 }

</bundles_post_ra>
